<compile_context>
chip_gen: v7x
topology: tpu7x:2x2x1
jax: 0.10.0
libtpu: 0.0.40
codegen_flags: <defaults>
</compile_context>

<pallas_src>
import functools

import jax
import jax.numpy as jnp
import numpy as np
from jax.experimental import pallas as pl
from jax.experimental.pallas import tpu as pltpu

D_MODEL = 64
CAT_COUNT = 5
SUBCAT_COUNT = 25
EPS = 1.1920929e-07  # torch.finfo(torch.float32).eps (nn.RMSNorm default eps)

RATIOS = {'category': 3, 'subcategory': 3, 'price': 3, 'avg_rating': 2,
          'num_ratings': 2, 'popular': 1, 'new_arrival': 1, 'on_sale': 1,
          'arrival_date': 1}
NUMERIC_KEYS = ['price', 'avg_rating', 'num_ratings', 'popular',
                'new_arrival', 'on_sale', 'arrival_date']
NUM_FEATS = len(NUMERIC_KEYS)                 # 7
EMB_ROWS = CAT_COUNT + SUBCAT_COUNT           # 30 one-hot rows
FUSE_ROWS = 48                                # 30 + 7 (v*inv) + 7 (inv) + 4 zero pad
PACK_W = 16                                   # packed input width


def _compute_dims():
    total = sum(RATIOS.values())
    unit = D_MODEL // total
    rem = D_MODEL % total
    dims = {k: v * unit for k, v in RATIOS.items()}
    dims['subcategory'] += rem
    return dims


DIMS = _compute_dims()
EMB_TOTAL = DIMS['category'] + DIMS['subcategory']        # 31
NUM_TOTAL = sum(DIMS[k] for k in NUMERIC_KEYS)            # 33
assert EMB_TOTAL + NUM_TOTAL == D_MODEL


def _round_up(x, m):
    return ((x + m - 1) // m) * m


# ---------------------------------------------------------------------------
# Pallas kernel: one batch tile of tb rows.
# ---------------------------------------------------------------------------
def item_tower_kernel(x_ref, tab_ref, quad_ref, vecs_ref, w1_ref, w2_ref,
                      out_ref):
    f32 = jnp.float32
    bf16 = jnp.bfloat16
    tb = x_ref.shape[0]

    packed = x_ref[...]                                   # [tb, 16] f32
    v = packed[:, :NUM_FEATS]                             # [tb, 7]  numerics
    cat = packed[:, NUM_FEATS:NUM_FEATS + 1].astype(jnp.int32)       # [tb, 1]
    sub = packed[:, NUM_FEATS + 1:NUM_FEATS + 2].astype(jnp.int32)   # [tb, 1]

    # --- one-hot over the 30 fused table rows (cat -> rows 0..4, sub -> rows 5..29)
    lane = jax.lax.broadcasted_iota(jnp.int32, (tb, EMB_ROWS), 1)
    hit = ((lane == cat) | (lane == sub + CAT_COUNT)).astype(f32)

    # --- per-key RMSNorm statistics in the 7-lane domain:
    #     mean(enc_k^2) + eps = A_k*v^2 + B_k*v + C_k   (C_k already includes eps)
    qa = quad_ref[0:1, :]
    qb = quad_ref[1:2, :]
    qc = quad_ref[2:3, :]
    msq = (qa * v + qb) * v + qc
    inv = jax.lax.rsqrt(jnp.maximum(msq, EPS))            # clamp vs f32 cancellation

    # --- ONE fused matmul: [one-hot | v*inv | inv | 0] @ table[48, 64]
    #     = concat(cat_emb, sub_emb, RMSNorm(enc_k)*gamma_k ...) at final lane offsets.
    zpad = jnp.zeros((tb, FUSE_ROWS - EMB_ROWS - 2 * NUM_FEATS), f32)
    lhs = jnp.concatenate([hit, v * inv, inv, zpad], axis=-1)        # [tb, 48]
    x = jnp.dot(lhs.astype(bf16), tab_ref[...],
                preferred_element_type=f32)                          # [tb, 64]

    # --- self.norm  (gamma = vecs row 1, lanes 0..63)
    gnorm = vecs_ref[1:2, 0:D_MODEL]
    x = x * jax.lax.rsqrt(jnp.mean(x * x, axis=-1, keepdims=True) + EPS) * gnorm

    # --- self.norm1 (gamma folded into w1 host-side) + MLP + residual
    x1 = x * jax.lax.rsqrt(jnp.mean(x * x, axis=-1, keepdims=True) + EPS)
    b1 = vecs_ref[0:1, :]                                            # [1, 128]
    y = jnp.maximum(
        jnp.dot(x1.astype(bf16), w1_ref[...], preferred_element_type=f32) + b1,
        0.0)                                                         # [tb, 128]
    b2 = vecs_ref[2:3, 0:D_MODEL]                                    # [1, 64]
    out = jnp.maximum(
        jnp.dot(y.astype(bf16), w2_ref[...], preferred_element_type=f32) + b2,
        0.0) + x                                                     # [tb, 64]
    out_ref[...] = out.astype(out_ref.dtype)


# ---------------------------------------------------------------------------
# Parameter init (deterministic; mirrors nn.Module shapes)
# ---------------------------------------------------------------------------
def init_params(key):
    def uniform(i, shape, scale=1.0):
        return scale * jax.random.uniform(jax.random.fold_in(key, i), shape,
                                          jnp.float32, -0.5, 0.5)

    p = {}
    p['emb_category'] = jax.random.normal(
        jax.random.fold_in(key, 1), (CAT_COUNT, DIMS['category']), jnp.float32)
    p['emb_subcategory'] = jax.random.normal(
        jax.random.fold_in(key, 2), (SUBCAT_COUNT, DIMS['subcategory']),
        jnp.float32)
    idx = 10
    for k in NUMERIC_KEYS:
        p[f'enc_w_{k}'] = uniform(idx, (DIMS[k],)); idx += 1   # Linear(1,d).weight[:,0]
        p[f'enc_b_{k}'] = uniform(idx, (DIMS[k],)); idx += 1
        p[f'norm_g_{k}'] = jnp.ones((DIMS[k],), jnp.float32)
    p['fn1_w'] = uniform(50, (2 * D_MODEL, D_MODEL), 0.2)      # [out, in]
    p['fn1_b'] = uniform(51, (2 * D_MODEL,))
    p['fn2_w'] = uniform(52, (D_MODEL, 2 * D_MODEL), 0.2)
    p['fn2_b'] = uniform(53, (D_MODEL,))
    p['norm_g'] = jnp.ones((D_MODEL,), jnp.float32)
    p['norm1_g'] = jnp.ones((D_MODEL,), jnp.float32)
    return p


# ---------------------------------------------------------------------------
# Fold / pre-place parameters into 5 kernel constants (done once, on host).
# ---------------------------------------------------------------------------
def build_kernel_constants(p):
    d_cat, d_sub = DIMS['category'], DIMS['subcategory']

    # Fused [48, 64] table:
    #   rows  0..4  : category embedding rows placed at lanes 0..d_cat-1
    #   rows  5..29 : subcategory embedding rows placed at lanes d_cat..30
    #   rows 30..36 : enc_w * gamma per numeric key   (multiplied by v*inv)
    #   rows 37..43 : enc_b * gamma per numeric key   (multiplied by inv)
    #   rows 44..47 : zero padding
    tab = np.zeros((FUSE_ROWS, D_MODEL), np.float32)
    tab[:CAT_COUNT, :d_cat] = np.asarray(p['emb_category'])
    tab[CAT_COUNT:EMB_ROWS, d_cat:d_cat + d_sub] = np.asarray(p['emb_subcategory'])

    quad = np.zeros((3, NUM_FEATS), np.float32)   # rows: A, B, C(+eps)
    off = EMB_TOTAL
    for i, k in enumerate(NUMERIC_KEYS):
        d = DIMS[k]
        w = np.asarray(p[f'enc_w_{k}'], np.float32)
        b = np.asarray(p[f'enc_b_{k}'], np.float32)
        g = np.asarray(p[f'norm_g_{k}'], np.float32)
        tab[EMB_ROWS + i, off:off + d] = w * g
        tab[EMB_ROWS + NUM_FEATS + i, off:off + d] = b * g
        quad[0, i] = np.mean(w * w)
        quad[1, i] = 2.0 * np.mean(w * b)
        quad[2, i] = np.mean(b * b) + EPS
        off += d

    # MLP weights in [in, out] layout; norm1 gamma folded into w1 rows.
    w1 = np.asarray(p['fn1_w'], np.float32).T * np.asarray(
        p['norm1_g'], np.float32)[:, None]                         # [64, 128]
    w2 = np.asarray(p['fn2_w'], np.float32).T                      # [128, 64]

    # Merged vector constants: row 0 = fn1 bias (128 lanes),
    # row 1 lanes 0..63 = norm gamma, row 2 lanes 0..63 = fn2 bias.
    vecs = np.zeros((3, 2 * D_MODEL), np.float32)
    vecs[0, :] = np.asarray(p['fn1_b'], np.float32)
    vecs[1, :D_MODEL] = np.asarray(p['norm_g'], np.float32)
    vecs[2, :D_MODEL] = np.asarray(p['fn2_b'], np.float32)

    return dict(table=jnp.asarray(tab, jnp.bfloat16),
                quad=jnp.asarray(quad),
                vecs=jnp.asarray(vecs),
                w1=jnp.asarray(w1, jnp.bfloat16),
                w2=jnp.asarray(w2, jnp.bfloat16))


CONST_ORDER = ('table', 'quad', 'vecs', 'w1', 'w2')


# ---------------------------------------------------------------------------
# Wrapper: batch-tiled pallas_call.
# ---------------------------------------------------------------------------
@functools.partial(jax.jit, static_argnames=('block_rows',))
def item_tower_forward(consts, category, subcategory, *numerics,
                       block_rows=512):
    B = category.shape[0]
    # Pack [numerics(7) | cat | sub | zeros(7)] into one [B, 16] f32 array.
    cols = ([jnp.reshape(n, (B, 1)).astype(jnp.float32) for n in numerics]
            + [jnp.reshape(category, (B, 1)).astype(jnp.float32),
               jnp.reshape(subcategory, (B, 1)).astype(jnp.float32),
               jnp.zeros((B, PACK_W - NUM_FEATS - 2), jnp.float32)])
    packed = jnp.concatenate(cols, axis=-1)                          # [B, 16]

    # Balanced tiling: >=2 grid steps when feasible (v7x has 2 TensorCores),
    # tail padding bounded to <8 rows per tile.
    n_tiles = max(-(-B // block_rows), 2 if B >= 16 else 1)
    tb = _round_up(-(-B // n_tiles), 8)
    b_pad = n_tiles * tb
    if b_pad != B:
        packed = jnp.pad(packed, ((0, b_pad - B), (0, 0)))

    const_args = [consts[k] for k in CONST_ORDER]
    const_bytes = sum(int(np.prod(a.shape)) * a.dtype.itemsize for a in const_args)
    cost = pl.CostEstimate(
        flops=2 * b_pad * (FUSE_ROWS * D_MODEL + 2 * D_MODEL * 2 * D_MODEL),
        transcendentals=b_pad * (NUM_FEATS + 2),
        bytes_accessed=b_pad * (PACK_W + D_MODEL) * 4 + const_bytes)

    out = pl.pallas_call(
        item_tower_kernel,
        out_shape=jax.ShapeDtypeStruct((b_pad, D_MODEL), jnp.float32),
        grid=(n_tiles,),
        in_specs=[pl.BlockSpec((tb, PACK_W), lambda i: (i, 0))]
        + [pl.BlockSpec(a.shape, lambda i: (0, 0)) for a in const_args],
        out_specs=pl.BlockSpec((tb, D_MODEL), lambda i: (i, 0)),
        compiler_params=pltpu.CompilerParams(
            dimension_semantics=("parallel",),
            vmem_limit_bytes=32 * 1024 * 1024),
        cost_estimate=cost,
    )(packed, *const_args)
    return out[:B]


# ---------------------------------------------------------------------------
# Pure-JAX f32 reference (mirrors the PyTorch forward) for correctness check.
# ---------------------------------------------------------------------------
def reference_forward(p, category, subcategory, *numerics):
    hi = jax.lax.Precision.HIGHEST

    def rms(v, g):
        m = jnp.mean(v * v, axis=-1, keepdims=True)
        return v * jax.lax.rsqrt(m + EPS) * g

    cat_out = [p['emb_category'][category], p['emb_subcategory'][subcategory]]
    num_out = []
    for k, v in zip(NUMERIC_KEYS, numerics):
        enc = v * p[f'enc_w_{k}'][None, :] + p[f'enc_b_{k}'][None, :]
        num_out.append(rms(enc, p[f'norm_g_{k}']))
    x = jnp.concatenate(cat_out + num_out, axis=-1)
    x = rms(x, p['norm_g'])
    y = jax.nn.relu(jnp.dot(rms(x, p['norm1_g']), p['fn1_w'].T, precision=hi)
                    + p['fn1_b'])
    return jax.nn.relu(jnp.dot(y, p['fn2_w'].T, precision=hi)
                       + p['fn2_b']) + x


if __name__ == "__main__":
    key = jax.random.PRNGKey(0)
    params = init_params(jax.random.fold_in(key, 100))
    consts = build_kernel_constants(params)

    # (B=8, single tile) and (B=37, multi-tile with padding) small smoke tests.
    for B, block_rows in ((8, 512), (37, 16)):
        ks = jax.random.split(jax.random.fold_in(key, B), 2 + NUM_FEATS)
        category = jax.random.randint(ks[0], (B,), 0, CAT_COUNT)
        subcategory = jax.random.randint(ks[1], (B,), 0, SUBCAT_COUNT)
        numerics = [jax.random.normal(ks[2 + i], (B, 1), jnp.float32)
                    for i in range(NUM_FEATS)]

        out = jax.block_until_ready(
            item_tower_forward(consts, category, subcategory, *numerics,
                               block_rows=block_rows))
        ref = jax.block_until_ready(
            reference_forward(params, category, subcategory, *numerics))

        # Kernel matmuls use bf16 operands with f32 accumulation (single-pass MXU),
        # so allow ~1e-2-scale deviation from the f32 reference.
        np.testing.assert_allclose(np.asarray(out), np.asarray(ref),
                                   rtol=2e-2, atol=2e-2)
    print("KERNEL_OK")
</pallas_src>

<mosaic_0001>
module attributes {stable_mosaic.version = 11 : i64} {
  func.func @item_tower_kernel(%arg0: i32, %arg1: memref<8x16xf32, #tpu.memory_space<vmem>>, %arg2: memref<48x64xbf16, #tpu.memory_space<vmem>>, %arg3: memref<3x7xf32, #tpu.memory_space<vmem>>, %arg4: memref<3x128xf32, #tpu.memory_space<vmem>>, %arg5: memref<64x128xbf16, #tpu.memory_space<vmem>>, %arg6: memref<128x64xbf16, #tpu.memory_space<vmem>>, %arg7: memref<8x64xf32, #tpu.memory_space<vmem>>) attributes {dimension_semantics = [#tpu.dimension_semantics<parallel>], iteration_bounds = array<i64: 1>, scalar_prefetch = 0 : i64, scratch_operands = 0 : i64, tpu.core_type = #tpu.core_type<tc>, window_params = [{transform_indices = @transform_0, window_bounds = array<i64: 8, 16>}, {pipeline_mode = #tpu.pipeline_mode<synchronous>, transform_indices = @transform_1, window_bounds = array<i64: 48, 64>}, {pipeline_mode = #tpu.pipeline_mode<synchronous>, transform_indices = @transform_2, window_bounds = array<i64: 3, 7>}, {pipeline_mode = #tpu.pipeline_mode<synchronous>, transform_indices = @transform_3, window_bounds = array<i64: 3, 128>}, {pipeline_mode = #tpu.pipeline_mode<synchronous>, transform_indices = @transform_4, window_bounds = array<i64: 64, 128>}, {pipeline_mode = #tpu.pipeline_mode<synchronous>, transform_indices = @transform_5, window_bounds = array<i64: 128, 64>}, {transform_indices = @transform_6, window_bounds = array<i64: 8, 64>}]} {
    %c0 = arith.constant 0 : index
    %c0_0 = arith.constant 0 : index
    %0 = vector.load %arg1[%c0, %c0_0] : memref<8x16xf32, #tpu.memory_space<vmem>>, vector<8x16xf32>
    %1 = vector.extract_strided_slice %0 {offsets = [0, 0], sizes = [8, 7], strides = [1, 1]} : vector<8x16xf32> to vector<8x7xf32>
    %2 = vector.extract_strided_slice %0 {offsets = [0, 7], sizes = [8, 1], strides = [1, 1]} : vector<8x16xf32> to vector<8x1xf32>
    %3 = arith.fptosi %2 : vector<8x1xf32> to vector<8x1xi32>
    %4 = vector.extract_strided_slice %0 {offsets = [0, 8], sizes = [8, 1], strides = [1, 1]} : vector<8x16xf32> to vector<8x1xf32>
    %5 = arith.fptosi %4 : vector<8x1xf32> to vector<8x1xi32>
    %6 = tpu.iota {dimensions = array<i32: 1>} : vector<8x30xi32>
    %7 = vector.broadcast %3 : vector<8x1xi32> to vector<8x30xi32>
    %8 = arith.cmpi eq, %6, %7 : vector<8x30xi32>
    %c5_i32 = arith.constant 5 : i32
    %9 = vector.broadcast %c5_i32 : i32 to vector<8x1xi32>
    %10 = arith.addi %5, %9 : vector<8x1xi32>
    %11 = vector.broadcast %10 : vector<8x1xi32> to vector<8x30xi32>
    %12 = arith.cmpi eq, %6, %11 : vector<8x30xi32>
    %13 = arith.ori %8, %12 : vector<8x30xi1>
    %14 = arith.extui %13 : vector<8x30xi1> to vector<8x30xi32>
    %15 = arith.sitofp %14 : vector<8x30xi32> to vector<8x30xf32>
    %c0_1 = arith.constant 0 : index
    %c0_2 = arith.constant 0 : index
    %16 = vector.load %arg3[%c0_1, %c0_2] : memref<3x7xf32, #tpu.memory_space<vmem>>, vector<1x7xf32>
    %c1 = arith.constant 1 : index
    %c0_3 = arith.constant 0 : index
    %17 = vector.load %arg3[%c1, %c0_3] : memref<3x7xf32, #tpu.memory_space<vmem>>, vector<1x7xf32>
    %c2 = arith.constant 2 : index
    %c0_4 = arith.constant 0 : index
    %18 = vector.load %arg3[%c2, %c0_4] : memref<3x7xf32, #tpu.memory_space<vmem>>, vector<1x7xf32>
    %19 = vector.broadcast %16 : vector<1x7xf32> to vector<8x7xf32>
    %20 = arith.mulf %19, %1 : vector<8x7xf32>
    %21 = vector.broadcast %17 : vector<1x7xf32> to vector<8x7xf32>
    %22 = arith.addf %20, %21 : vector<8x7xf32>
    %23 = arith.mulf %22, %1 : vector<8x7xf32>
    %24 = vector.broadcast %18 : vector<1x7xf32> to vector<8x7xf32>
    %25 = arith.addf %23, %24 : vector<8x7xf32>
    %cst = arith.constant 1.1920929E-7 : f32
    %26 = vector.broadcast %cst : f32 to vector<8x7xf32>
    %27 = arith.maximumf %25, %26 : vector<8x7xf32>
    %28 = math.rsqrt %27 : vector<8x7xf32>
    %cst_5 = arith.constant 0.000000e+00 : f32
    %29 = vector.broadcast %cst_5 : f32 to vector<8x4xf32>
    %30 = arith.mulf %1, %28 : vector<8x7xf32>
    %31 = tpu.concatenate %15, %30, %28, %29 in 1 : vector<8x30xf32>, vector<8x7xf32>, vector<8x7xf32>, vector<8x4xf32> -> vector<8x48xf32>
    %32 = arith.truncf %31 : vector<8x48xf32> to vector<8x48xbf16>
    %c0_6 = arith.constant 0 : index
    %c0_7 = arith.constant 0 : index
    %33 = vector.load %arg2[%c0_6, %c0_7] : memref<48x64xbf16, #tpu.memory_space<vmem>>, vector<48x64xbf16>
    %cst_8 = arith.constant dense<0.000000e+00> : vector<8x64xf32>
    %34 = tpu.matmul %32, %33, %cst_8 {dimension_numbers = #tpu.dot_dimension_numbers<[1], [0], [0], [1], [0, 0, 1, 1], [], []>} : vector<8x48xbf16>, vector<48x64xbf16>, vector<8x64xf32> -> vector<8x64xf32>
    %c1_9 = arith.constant 1 : index
    %c0_10 = arith.constant 0 : index
    %35 = vector.load %arg4[%c1_9, %c0_10] : memref<3x128xf32, #tpu.memory_space<vmem>>, vector<1x64xf32>
    %36 = arith.mulf %34, %34 : vector<8x64xf32>
    %cst_11 = arith.constant dense<0.000000e+00> : vector<8xf32>
    %37 = vector.multi_reduction <add>, %36, %cst_11 [1] : vector<8x64xf32> to vector<8xf32>
    %38 = vector.shape_cast %37 : vector<8xf32> to vector<8x1xf32>
    %cst_12 = arith.constant 6.400000e+01 : f32
    %39 = vector.broadcast %cst_12 : f32 to vector<8x1xf32>
    %40 = arith.divf %38, %39 : vector<8x1xf32>
    %cst_13 = arith.constant 1.1920929E-7 : f32
    %41 = vector.broadcast %cst_13 : f32 to vector<8x1xf32>
    %42 = arith.addf %40, %41 : vector<8x1xf32>
    %43 = math.rsqrt %42 : vector<8x1xf32>
    %44 = vector.broadcast %43 : vector<8x1xf32> to vector<8x64xf32>
    %45 = arith.mulf %34, %44 : vector<8x64xf32>
    %46 = vector.broadcast %35 : vector<1x64xf32> to vector<8x64xf32>
    %47 = arith.mulf %45, %46 : vector<8x64xf32>
    %48 = arith.mulf %47, %47 : vector<8x64xf32>
    %cst_14 = arith.constant dense<0.000000e+00> : vector<8xf32>
    %49 = vector.multi_reduction <add>, %48, %cst_14 [1] : vector<8x64xf32> to vector<8xf32>
    %50 = vector.shape_cast %49 : vector<8xf32> to vector<8x1xf32>
    %cst_15 = arith.constant 6.400000e+01 : f32
    %51 = vector.broadcast %cst_15 : f32 to vector<8x1xf32>
    %52 = arith.divf %50, %51 : vector<8x1xf32>
    %cst_16 = arith.constant 1.1920929E-7 : f32
    %53 = vector.broadcast %cst_16 : f32 to vector<8x1xf32>
    %54 = arith.addf %52, %53 : vector<8x1xf32>
    %55 = math.rsqrt %54 : vector<8x1xf32>
    %56 = vector.broadcast %55 : vector<8x1xf32> to vector<8x64xf32>
    %57 = arith.mulf %47, %56 : vector<8x64xf32>
    %c0_17 = arith.constant 0 : index
    %c0_18 = arith.constant 0 : index
    %58 = vector.load %arg4[%c0_17, %c0_18] : memref<3x128xf32, #tpu.memory_space<vmem>>, vector<1x128xf32>
    %59 = arith.truncf %57 : vector<8x64xf32> to vector<8x64xbf16>
    %c0_19 = arith.constant 0 : index
    %c0_20 = arith.constant 0 : index
    %60 = vector.load %arg5[%c0_19, %c0_20] : memref<64x128xbf16, #tpu.memory_space<vmem>>, vector<64x128xbf16>
    %cst_21 = arith.constant dense<0.000000e+00> : vector<8x128xf32>
    %61 = tpu.matmul %59, %60, %cst_21 {dimension_numbers = #tpu.dot_dimension_numbers<[1], [0], [0], [1], [0, 0, 1, 1], [], []>} : vector<8x64xbf16>, vector<64x128xbf16>, vector<8x128xf32> -> vector<8x128xf32>
    %62 = vector.broadcast %58 : vector<1x128xf32> to vector<8x128xf32>
    %63 = arith.addf %61, %62 : vector<8x128xf32>
    %cst_22 = arith.constant 0.000000e+00 : f32
    %64 = vector.broadcast %cst_22 : f32 to vector<8x128xf32>
    %65 = arith.maximumf %63, %64 : vector<8x128xf32>
    %c2_23 = arith.constant 2 : index
    %c0_24 = arith.constant 0 : index
    %66 = vector.load %arg4[%c2_23, %c0_24] : memref<3x128xf32, #tpu.memory_space<vmem>>, vector<1x64xf32>
    %67 = arith.truncf %65 : vector<8x128xf32> to vector<8x128xbf16>
    %c0_25 = arith.constant 0 : index
    %c0_26 = arith.constant 0 : index
    %68 = vector.load %arg6[%c0_25, %c0_26] : memref<128x64xbf16, #tpu.memory_space<vmem>>, vector<128x64xbf16>
    %cst_27 = arith.constant dense<0.000000e+00> : vector<8x64xf32>
    %69 = tpu.matmul %67, %68, %cst_27 {dimension_numbers = #tpu.dot_dimension_numbers<[1], [0], [0], [1], [0, 0, 1, 1], [], []>} : vector<8x128xbf16>, vector<128x64xbf16>, vector<8x64xf32> -> vector<8x64xf32>
    %70 = vector.broadcast %66 : vector<1x64xf32> to vector<8x64xf32>
    %71 = arith.addf %69, %70 : vector<8x64xf32>
    %cst_28 = arith.constant 0.000000e+00 : f32
    %72 = vector.broadcast %cst_28 : f32 to vector<8x64xf32>
    %73 = arith.maximumf %71, %72 : vector<8x64xf32>
    %74 = arith.addf %73, %47 : vector<8x64xf32>
    %c0_29 = arith.constant 0 : index
    %c0_30 = arith.constant 0 : index
    %75 = vector.load %arg7[%c0_29, %c0_30] : memref<8x64xf32, #tpu.memory_space<vmem>>, vector<8x64xf32>
    tpu.vector_store %arg7[%c0_29, %c0_30], %74 {strides = array<i32>} : memref<8x64xf32, #tpu.memory_space<vmem>>, vector<8x64xf32>,
    return
  }
  func.func @transform_0(%arg0: i32) -> (i32, i32) {
    %c0_i32 = arith.constant 0 : i32
    %c0_i32_0 = arith.constant 0 : i32
    return %arg0, %c0_i32 : i32, i32
  }
  func.func @transform_1(%arg0: i32) -> (i32, i32) {
    %c0_i32 = arith.constant 0 : i32
    %c0_i32_0 = arith.constant 0 : i32
    %c0_i32_1 = arith.constant 0 : i32
    return %c0_i32, %c0_i32_0 : i32, i32
  }
  func.func @transform_2(%arg0: i32) -> (i32, i32) {
    %c0_i32 = arith.constant 0 : i32
    %c0_i32_0 = arith.constant 0 : i32
    %c0_i32_1 = arith.constant 0 : i32
    return %c0_i32, %c0_i32_0 : i32, i32
  }
  func.func @transform_3(%arg0: i32) -> (i32, i32) {
    %c0_i32 = arith.constant 0 : i32
    %c0_i32_0 = arith.constant 0 : i32
    %c0_i32_1 = arith.constant 0 : i32
    return %c0_i32, %c0_i32_0 : i32, i32
  }
  func.func @transform_4(%arg0: i32) -> (i32, i32) {
    %c0_i32 = arith.constant 0 : i32
    %c0_i32_0 = arith.constant 0 : i32
    %c0_i32_1 = arith.constant 0 : i32
    return %c0_i32, %c0_i32_0 : i32, i32
  }
  func.func @transform_5(%arg0: i32) -> (i32, i32) {
    %c0_i32 = arith.constant 0 : i32
    %c0_i32_0 = arith.constant 0 : i32
    %c0_i32_1 = arith.constant 0 : i32
    return %c0_i32, %c0_i32_0 : i32, i32
  }
  func.func @transform_6(%arg0: i32) -> (i32, i32) {
    %c0_i32 = arith.constant 0 : i32
    %c0_i32_0 = arith.constant 0 : i32
    return %arg0, %c0_i32 : i32, i32
  }
}

</mosaic_0001>

<bundles_post_ra>
// kernel: item_tower_forward.1
= control target key start
LH: loop header
LB: loop body
LE: loop exit
PB: predicated region body
PF: predicated region fallthrough
CT: control target
= control target key end

     0   :  { %v519_v3 = vmov 7   ;;  %v520_v12 = vmov 0.0   ;;  %v521_v15 = vmov 8   ;;  %s671_s0 = inlined_call_operand.vmem [shape: f32[8,16], index: 0, kind: input, shape index: {}]   ;;  %s672_s1 = inlined_call_operand.vmem [shape: bf16[48,64], index: 1, kind: input, shape index: {}]   ;;  %s673_s2 = inlined_call_operand.vmem [shape: f32[3,7], index: 2, kind: input, shape index: {}]   ;;  %s674_s3 = inlined_call_operand.vmem [shape: f32[3,128], index: 3, kind: input, shape index: {}]   ;;  %s675_s4 = inlined_call_operand.vmem [shape: bf16[64,128], index: 4, kind: input, shape index: {}]   ;;  %s676_s5 = inlined_call_operand.vmem [shape: bf16[128,64], index: 5, kind: input, shape index: {}]   ;;  %s677_s6 = inlined_call_operand.hbm [shape: f32[8,64], index: 6, kind: output, shape index: {}]  }
   0x1   :  { %v25_v0 = vld [vmem:[%s671_s0] sm:$0xff]  ;;  %472 = vset.pattern.permute.xlu0 %v519_v3  ;;  %421 = vmatprep.subr.bf16.mxu1 %v520_v12  ;;  %v475_v16 = vld [vmem:[%s672_s1 + $0x8] sm:$0xff]   ;;  %v476_v17 = vld [vmem:[%s672_s1 + $0x10] sm:$0xff]  }
   0x2   :  { %v380_v1 = vld [vmem:[%s673_s2] ss:$0 sm:$0xff]  ;;  %v381_v2 = vld [vmem:[%s673_s2 + $0x1] ss:$0 sm:$0xff]  ;;  %v463_v4 = vtrunc.f32 %v25_v0  ;;  %v382_v6 = vld [vmem:[%s673_s2 + $0x2] ss:$0 sm:$0xff]  ;;  %443 = vmatprep.subr.bf16.mxu0 %v520_v12 }
   0x3   :  { %v48_v5 = vmul.f32 %v380_v1, %v25_v0  ;;  %v474_v11 = vld [vmem:[%s672_s1] sm:$0xff]  }
   0x4   :  { %v464_v7 = vcvt.f32.s32 %v463_v4  ;;  %422 = vmatpush3.bf16.msra.mxu1 %v474_v11 }
   0x5   :  { %v53_v8 = vadd.f32 %v381_v2, %v48_v5  ;;  %423 = vmatprep.subr.bf16.mxu1 %v520_v12 }
   0x6   :  { %30 = vperm.xlu0 %472, %v464_v7   ;;  %v33_v10 = vadd.s32 5, %v464_v7 }
   0x7   :  { %v54_v9 = vmul.f32 %v53_v8, %v25_v0 }
   0x8   :  { %424 = vmatpush3.bf16.msra.mxu1 %v475_v16 }
   0x9   :  { %v59_v13 = vadd.f32 %v382_v6, %v54_v9  ;;  %425 = vmatprep.subr.bf16.mxu1 %v520_v12 }
   0xa   :  { %473 = vset.pattern.permute.xlu0 %v521_v15 }
   0xb   :  { %v60_v14 = vmax.f32 %v59_v13, 1.1920929e-07  ;;  %35 = vperm.xlu0 %473, %v33_v10  }
   0xd   :  { %489 = vrsqrt.f32 %v60_v14 }
   0xe   :  { %11 = vsyncpa [#allocation3], 0  ;;  %426 = vmatpush3.bf16.msra.mxu1 %v476_v17  ;;  %vm522_vm0 = vmmov 0   ;;  %s523_s9 = smov 30   ;;  %s524_s10 = smov 37   ;;  %v27_v20 = vlaneseq  ;;  %vm71_vm3 = vcmask 244736  }
   0xf   :  { %431 = vmatprep.subr.bf16.mxu1 %v520_v12  ;;  %427 = vmatprep.mubr.msk.bf16.mxu1 %vm522_vm0, %v520_v12  ;;  %vm73_vm5 = vcmask 302080   ;;  %vm75_vm6 = vcmask 359424   ;;  %vm102_vm7 = vcmask 392192   ;;  %vm148_vm8 = vcmask 523264   ;;  %v387_v41 = vld [vmem:[%s674_s3 + $0x1] ss:$0 sm:$0xff] }
  0x10   :  { %459 = vmatprep.mubr.msk.bf16.mxu0 %vm522_vm0, %v520_v12  ;;  %v28_v22 = vand.u32 127, %v27_v20  ;;  %v477_v46 = vld [vmem:[%s675_s4] sm:$0xff]   ;;  %v478_v47 = vld [vmem:[%s675_s4 + $0x8] sm:$0xff]   ;;  %v479_v48 = vld [vmem:[%s675_s4 + $0x10] sm:$0xff]  }
  0x11   :  { %v480_v49 = vld [vmem:[%s675_s4 + $0x18] sm:$0xff]   ;;  %v481_v50 = vld [vmem:[%s676_s5] sm:$0xff]   ;;  %v482_v51 = vld [vmem:[%s676_s5 + $0x8] sm:$0xff]  }
  0x12   :  { %444 = vmatpush3.bf16.msra.mxu0 %v481_v50  ;;  %v483_v52 = vld [vmem:[%s676_s5 + $0x10] sm:$0xff]   ;;  %v484_v53 = vld [vmem:[%s676_s5 + $0x18] sm:$0xff]   ;;  %v485_v54 = vld [vmem:[%s676_s5 + $0x20] sm:$0xff]  }
  0x13   :  { %445 = vmatprep.subr.bf16.mxu0 %v520_v12  ;;  %v486_v55 = vld [vmem:[%s676_s5 + $0x28] sm:$0xff]   ;;  %v487_v62 = vld [vmem:[%s676_s5 + $0x30] sm:$0xff]   ;;  %v488_v63 = vld [vmem:[%s676_s5 + $0x38] sm:$0xff]   ;;  %s525_s5 = smov [#allocation2]  }
  0x14   :  { %v394_v8 = vld [vmem:[%s674_s3 + $0x2] ss:$0 sm:$0xff]  ;;  %s371_s12 = sshll.u32 %s525_s5, 4  ;;  %s372_s12 = int_to_ptr.vmem [resolvable:$true] %s371_s12 }
  0x15   :  { %s495_s13 = scalar_lea.vmem %s372_s12, 128  ;;  %p500_p1 = scmp.lt.s32.totalorder %s372_s12, %s372_s12 }
  0x16   :  { %446 = vmatpush3.bf16.msra.mxu0 %v482_v51  ;;  %p496_p0 = scmp.ne.s32.totalorder %s372_s12, %s495_s13  ;;  %p501_p2 = scmp.lt.s32.totalorder %s495_s13, %s495_s13 }
  0x17   :  { %v490_v18 = vpop.eup %489  ;;  %447 = vmatprep.subr.bf16.mxu0 %v520_v12 }
  0x18   :  { %v62_v19 = vmul.f32 %v490_v18, %v25_v0  ;;  %v388_v0 = vld [vmem:[%s674_s3] ss:$0 sm:$0xff]  ;;  %p502_p3 = por %p501_p2, %p500_p1 }
  0x1a   :  { %64 = vrot.lane.b32.xlu1 %v62_v19, %s523_s9  ;;  %448 = vmatpush3.bf16.msra.mxu0 %v483_v52  ;;  %p503_p4 = pnand %p502_p3, %p496_p0 }
  0x1b   :  { %449 = vmatprep.subr.bf16.mxu0 %v520_v12 }
  0x1e   :  { %68 = vrot.lane.b32.xlu1 %v490_v18, %s524_s10  ;;  %450 = vmatpush3.bf16.msra.mxu0 %v484_v53 }
  0x1f   :  { %451 = vmatprep.subr.bf16.mxu0 %v520_v12 }
  0x22   :  { %452 = vmatpush3.bf16.msra.mxu0 %v485_v54 }
  0x23   :  { %453 = vmatprep.subr.bf16.mxu0 %v520_v12 }
  0x26   :  { %454 = vmatpush3.bf16.msra.mxu0 %v486_v55 }
  0x27   :  { %455 = vmatprep.subr.bf16.mxu0 %v520_v12 }
  0x2a   :  { %456 = vmatpush3.bf16.msra.mxu0 %v487_v62 }
  0x2b   :  { %457 = vmatprep.subr.bf16.mxu0 %v520_v12 }
  0x2e   :  { %458 = vmatpush3.bf16.msra.mxu0 %v488_v63 }
  0x85   :  { %v31_v21 = vpop.permute.xlu0 %30 }
  0x86   :  { %vm32_vm1 = vcmp.eq.s32.totalorder %v28_v22, %v31_v21 }
  0x8a   :  { %v36_v23 = vpop.permute.xlu0 %35 }
  0x8b   :  { %vm37_vm2 = vcmp.eq.s32.totalorder %v28_v22, %v36_v23 }
  0x8c   :  { %v65_v24 = vpop.permute.xlu1 %64  ;;  %vm38_vm4 = vmor %vm32_vm1, %vm37_vm2 }
  0x8d   :  { %v379_v25 = vsel %vm38_vm4, 1.0, %v520_v12 }
  0x8e   :  { %v72_v26 = vsel %vm71_vm3, %v379_v25, %v65_v24 }
  0x90   :  { %v69_v27 = vpop.permute.xlu1 %68 }
  0x91   :  { %v74_v28 = vsel %vm73_vm5, %v72_v26, %v69_v27 }
  0x92   :  { %v76_v29 = vsel %vm75_vm6, %v74_v28, 0.0 }
  0x93   :  { %v77_v30 = vpack.c.bf16 %v76_v29, %v76_v29 }
  0x95   :  { %428 = vmatmul.mubr.msk.bf16.vlgmr.msra.gmra.mrb[0].mxu1 %vm102_vm7, %v77_v30 }
  0x96   :  { %439 = vmatprep.mubr.msk.bf16.mxu1 %vm522_vm0, %v520_v12  ;;  %432 = vmatpush3.bf16.msra.mxu1 %v477_v46 }
  0x97   :  { %433 = vmatprep.subr.bf16.mxu1 %v520_v12 }
  0x9a   :  { %434 = vmatpush3.bf16.msra.mxu1 %v478_v47 }
  0x9b   :  { %435 = vmatprep.subr.bf16.mxu1 %v520_v12 }
  0x9e   :  { %436 = vmatpush3.bf16.msra.mxu1 %v479_v48 }
  0x9f   :  { %437 = vmatprep.subr.bf16.mxu1 %v520_v12 }
  0xa2   :  { %438 = vmatpush3.bf16.msra.mxu1 %v480_v49 }
 0x168   :  { %v140_v31 = vpop.f32.mrb[0].mxu1 }
 0x169   :  { %v147_v32 = vmul.f32 %v140_v31, %v140_v31  ;;  %v429_v33 = vpop.f32.mrb[1].mxu1 }
 0x16a   :  { %v143_v34 = vpop.f32.mrb[2].mxu1 }
 0x16b   :  { %v430_v35 = vpop.f32.mrb[3].mxu1  ;;  %v149_v36 = vsel %vm148_vm8, %v147_v32, 0.0 }
 0x16c   :  { %150 = vadd.xlane.f32.xlu1 %v149_v36 }
 0x1f9   :  { %v151_v37 = vpop.xlane.xlu1 %150 }
 0x1fa   :  { %v153_v38 = vmul.f32 0.015625, %v151_v37 }
 0x1fc   :  { %v154_v39 = vadd.f32 1.1920929e-07, %v153_v38 }
 0x1fe   :  { %491 = vrsqrt.f32 %v154_v39 }
 0x208   :  { %v492_v40 = vpop.eup %491 }
 0x209   :  { %v156_v42 = vmul.f32 %v492_v40, %v140_v31 }
 0x20b   :  { %v598_v43 = vmul.f32 %v387_v41, %v156_v42 }
 0x20d   :  { %v162_v44 = vmul.f32 %v598_v43, %v598_v43 }
 0x20f   :  { %v163_v45 = vsel %vm148_vm8, %v162_v44, 0.0 }
 0x210   :  { %164 = vadd.xlane.f32.xlu0 %v163_v45 }
 0x29d   :  { %v165_v56 = vpop.xlane.xlu0 %164 }
 0x29e   :  { %v166_v57 = vmul.f32 0.015625, %v165_v56 }
 0x2a0   :  { %v167_v58 = vadd.f32 1.1920929e-07, %v166_v57 }
 0x2a2   :  { %493 = vrsqrt.f32 %v167_v58 }
 0x2ac   :  { %v494_v59 = vpop.eup %493 }
 0x2ad   :  { %v169_v60 = vmul.f32 %v494_v59, %v598_v43 }
 0x2af   :  { %v171_v61 = vpack.c.bf16 %v169_v60, %v169_v60 }
 0x2b1   :  { %440 = vmatmul.mubr.msk.bf16.vlgmr.msra.gmra.mrb[4].mxu1 %vm148_vm8, %v171_v61 }
 0x384   :  { %v245_v1 = vpop.f32.mrb[4].mxu1 }
 0x385   :  { %v246_v2 = vadd.f32 %v388_v0, %v245_v1  ;;  %v441_v3 = vpop.f32.mrb[5].mxu1 }
 0x386   :  { %v248_v4 = vpop.f32.mrb[6].mxu1 }
 0x387   :  { %v251_v5 = vmax.f32 %v246_v2, 0.0  ;;  %v442_v6 = vpop.f32.mrb[7].mxu1 }
 0x389   :  { %v253_v7 = vpack.c.bf16 %v251_v5, %v251_v5 }
 0x38b   :  { %460 = vmatmul.mubr.bf16.vlgmr.msra.gmra.mrb[0].mxu0 %v253_v7 }
 0x45e   :  { %v356_v9 = vpop.f32.mrb[0].mxu0 }
 0x45f   :  { %v357_v10 = vadd.f32 %v394_v8, %v356_v9  ;;  %v461_v11 = vpop.f32.mrb[1].mxu0 }
 0x460   :  { %v359_v12 = vpop.f32.mrb[2].mxu0 }
 0x461   :  { %v362_v13 = vmax.f32 %v357_v10, 0.0  ;;  %v462_v14 = vpop.f32.mrb[3].mxu0 }
 0x463   :  { %v363_v15 = vadd.f32 %v362_v13, %v598_v43 }
 0x465   :  { %364 = vst.msk [vmem:[#allocation2] sm:$0xff] %vm148_vm8, %v363_v15 }
 0x466   :  { %506 = shalt.err (!%p503_p4)
}
 0x467   :  { %s507_s15 = scalar_lea.hbm %s677_s6, 128 }
 0x468   :  { %p508_p5 = scmp.ne.s32.totalorder %s677_s6, %s507_s15  ;;  %p511_p6 = scmp.lt.u32.totalorder %s507_s15, %s677_s6 }
 0x46a   :  { %p513_p7 = pnand %p511_p6, %p508_p5 }
 0x46c   :  { %516 = shalt.err (!%p513_p7)
}
 0x46d   :  { %374 = dma.vmem_to_hbm [thread:$0]  %s372_s12, 128, %s677_s6, [#allocation3]  }
 0x46e   :  { %517 = dma.done.wait [#allocation3], 128  }
 0x46f   :  { %518 = vsyncadd [#allocation3], 4294967168 }
 0x470   :  { %378 = vsyncpa [#allocation3], 1 }

</bundles_post_ra>
